<compile_context>
chip_gen: v7x
topology: tpu7x:2x2x1
jax: 0.10.0
libtpu: 0.0.40
codegen_flags: <defaults>
</compile_context>

<pallas_src>
import jax
import jax.numpy as jnp
import numpy as np
from jax.experimental import pallas as pl
from jax.experimental.pallas import tpu as pltpu

LANES = 128          # lane-dense output / padded-N slab width
_TB_DEFAULT = 1024   # batch tile; double-buffered (1024,512) f32 tiles fit
                     # comfortably in v5e's 16 MiB scoped VMEM (and v6e/v7x)


def _round_up(x, m):
    return ((x + m - 1) // m) * m


# ----------------------------- kernels --------------------------------------

def _actor_kernel(cnn_ref, extra_ref, w_cnn_ref, w_extra_ref, b_ref, mean_ref):
    """mean = cnn @ W_cnn + extra @ W_extra + b  (extra = [command, speed]).

    Big dot has K = 512 exactly; the 4 extra feature columns are rank-1 VPU
    corrections.  Output N is padded to 128 lanes so the store is dense.
    """
    acc = jnp.dot(cnn_ref[...], w_cnn_ref[...],
                  preferred_element_type=jnp.float32)              # [TB, 128]
    extra = extra_ref[...]                                         # [TB, 4]
    w_extra = w_extra_ref[...]                                     # [4, 128]
    for k in range(extra.shape[1]):
        acc = acc + extra[:, k:k + 1] * w_extra[k:k + 1, :]
    mean_ref[...] = (acc + b_ref[...]).astype(mean_ref.dtype)


def _branched_actor_kernel(cnn_ref, cmd_ref, spd_ref, w_ref, ws_ref, b_ref,
                           ls_ref, mean_ref, logstd_ref):
    """Branched head: per-branch lane-padded weights, command-weighted mix."""
    cnn = cnn_ref[...]                                             # [TB, 512]
    cmd = cmd_ref[...]                                             # [TB, 3]
    spd = spd_ref[...]                                             # [TB, 1]
    mean = jnp.zeros(mean_ref.shape, jnp.float32)
    logstd = jnp.zeros(logstd_ref.shape, jnp.float32)
    for k in range(3):
        ck = cmd[:, k:k + 1]                                       # [TB, 1]
        mk = jnp.dot(cnn, w_ref[k], preferred_element_type=jnp.float32)
        mk = mk + spd * ws_ref[k:k + 1, :] + b_ref[k:k + 1, :]     # [TB, 128]
        mean = mean + ck * mk
        logstd = logstd + ck * ls_ref[k:k + 1, :]
    mean_ref[...] = mean.astype(mean_ref.dtype)
    logstd_ref[...] = logstd.astype(logstd_ref.dtype)


# ----------------------------- wrappers --------------------------------------

def _pad_lanes(x):
    """Pad last dim up to LANES with zeros (params only; trace-time, tiny)."""
    return jnp.pad(x, ((0, 0), (0, LANES - x.shape[1])))


def actor_forward(cnn_out, command, speed, params, branched=False,
                  tile_b=_TB_DEFAULT):
    """Pallas implementation of Actor.forward.

    cnn_out: [B, 512], command: [B, 3], speed: [B, 1].
    params = (w [D_in, N_out] (transposed vs torch), b [N_out], logstd [1, N_ls]).
    Returns (action_mean [B, num_actions], action_logstd [B, num_actions]).
    """
    w, b, logstd = params
    B, D_CNN = cnn_out.shape                       # D_CNN = 512

    # Batch tiling: TB multiple of 8, pad B up to a multiple of TB.
    TB = tile_b if B >= tile_b else _round_up(B, 8)
    Bp = _round_up(B, TB)
    grid = (pl.cdiv(Bp, TB),)

    def pad_rows(x):
        x = x.astype(jnp.float32)
        return x if Bp == B else jnp.pad(x, ((0, Bp - B), (0, 0)))

    cnn_p = pad_rows(cnn_out)
    cmd_p = pad_rows(command)
    spd_p = pad_rows(speed)

    # TODO(synk): optionally cast cnn/weights to bf16 (f32 accumulate) if PPO
    # numerics allow; kept f32 here to preserve exact module semantics.
    cparams = pltpu.CompilerParams(dimension_semantics=("parallel",))

    if not branched:
        N = w.shape[1]                                           # num_actions
        # command+speed is only 4 columns -> negligible concat traffic.
        extra = jnp.concatenate([cmd_p, spd_p], axis=1)          # [Bp, 4]
        w_cnn = _pad_lanes(w[:D_CNN, :])                         # [512, 128]
        w_extra = _pad_lanes(w[D_CNN:, :])                       # [4, 128]
        b_pad = _pad_lanes(b.reshape(1, N))                      # [1, 128]

        cost = pl.CostEstimate(
            flops=2 * Bp * D_CNN * LANES,
            transcendentals=0,
            bytes_accessed=4 * (Bp * (D_CNN + 4 + LANES) + D_CNN * LANES))

        mean_slab = pl.pallas_call(
            _actor_kernel,
            grid=grid,
            out_shape=jax.ShapeDtypeStruct((Bp, LANES), jnp.float32),
            in_specs=[
                pl.BlockSpec((TB, D_CNN), lambda i: (i, 0)),     # cnn features
                pl.BlockSpec((TB, 4), lambda i: (i, 0)),         # [cmd, speed]
                pl.BlockSpec((D_CNN, LANES), lambda i: (0, 0)),  # W (resident)
                pl.BlockSpec((4, LANES), lambda i: (0, 0)),      # W extra
                pl.BlockSpec((1, LANES), lambda i: (0, 0)),      # bias
            ],
            out_specs=pl.BlockSpec((TB, LANES), lambda i: (i, 0)),
            compiler_params=cparams,
            cost_estimate=cost,
        )(cnn_p, extra, w_cnn, w_extra, b_pad)

        mean = mean_slab[:B, :N]
        # Constant logstd: broadcast in the wrapper, no kernel store needed.
        return mean, jnp.broadcast_to(logstd, mean.shape)

    else:
        Nout = w.shape[1]                                        # 3 * num_actions
        NA = Nout // 3
        w_cnn = w[:D_CNN, :]                                     # [512, 9]
        w_spd = w[D_CNN:, :]                                     # [1, 9]
        b2 = b.reshape(1, Nout)
        # Per-branch lane-padded params (trace-time slicing of tiny constants).
        wc_stack = jnp.stack(
            [_pad_lanes(w_cnn[:, k * NA:(k + 1) * NA]) for k in range(3)])       # [3,512,128]
        ws_stack = jnp.concatenate(
            [_pad_lanes(w_spd[:, k * NA:(k + 1) * NA]) for k in range(3)], 0)    # [3,128]
        b_stack = jnp.concatenate(
            [_pad_lanes(b2[:, k * NA:(k + 1) * NA]) for k in range(3)], 0)       # [3,128]
        ls_stack = jnp.concatenate(
            [_pad_lanes(logstd[:, k * NA:(k + 1) * NA]) for k in range(3)], 0)   # [3,128]

        cost = pl.CostEstimate(
            flops=2 * 3 * Bp * D_CNN * LANES,
            transcendentals=0,
            bytes_accessed=4 * (Bp * (D_CNN + 4 + 2 * LANES) + 3 * D_CNN * LANES))

        mean_slab, logstd_slab = pl.pallas_call(
            _branched_actor_kernel,
            grid=grid,
            out_shape=(jax.ShapeDtypeStruct((Bp, LANES), jnp.float32),
                       jax.ShapeDtypeStruct((Bp, LANES), jnp.float32)),
            in_specs=[
                pl.BlockSpec((TB, D_CNN), lambda i: (i, 0)),         # cnn
                pl.BlockSpec((TB, 3), lambda i: (i, 0)),             # command
                pl.BlockSpec((TB, 1), lambda i: (i, 0)),             # speed
                pl.BlockSpec((3, D_CNN, LANES), lambda i: (0, 0, 0)),  # per-branch W
                pl.BlockSpec((3, LANES), lambda i: (0, 0)),          # speed weights
                pl.BlockSpec((3, LANES), lambda i: (0, 0)),          # biases
                pl.BlockSpec((3, LANES), lambda i: (0, 0)),          # logstds
            ],
            out_specs=(pl.BlockSpec((TB, LANES), lambda i: (i, 0)),
                       pl.BlockSpec((TB, LANES), lambda i: (i, 0))),
            compiler_params=cparams,
            cost_estimate=cost,
        )(cnn_p, cmd_p, spd_p, wc_stack, ws_stack, b_stack, ls_stack)

        mean = mean_slab[:B, :NA]
        logstd_out = logstd_slab[:B, :NA]
        return mean, logstd_out


def actor_forward_ref(cnn_out, command, speed, params, branched=False):
    """Pure-JAX reference mirroring the PyTorch module."""
    w, b, logstd = params
    if branched:
        feats = jnp.concatenate([cnn_out, speed], axis=1)
        means = feats @ w + b
        mean = (command[:, 0:1] * means[:, 0:3]
                + command[:, 1:2] * means[:, 3:6]
                + command[:, 2:3] * means[:, 6:9])
        log = (command[:, 0:1] * logstd[:, 0:3]
               + command[:, 1:2] * logstd[:, 3:6]
               + command[:, 2:3] * logstd[:, 6:9])
        return mean, jnp.broadcast_to(log, mean.shape)
    else:
        feats = jnp.concatenate([cnn_out, command, speed], axis=1)
        mean = feats @ w + b
        return mean, jnp.broadcast_to(logstd, mean.shape)


def make_params(key, branched=False, num_actions=3):
    """Deterministic params matching the torch __init__ shapes (orthogonal, std=0.01)."""
    if branched:
        d_in, d_out = 512 + 1, 3 * num_actions
        logstd = jnp.array([[-3.2, -2.5, -3.2, -3.2, -2.5, -3.2, -3.2, -2.5, -3.2]],
                           dtype=jnp.float32)
    else:
        d_in, d_out = 512 + 3 + 1, num_actions
        logstd = jnp.array([[-3.2, -2.5, -3.2]], dtype=jnp.float32)
    # torch weight is [out, in]; we store it transposed as [in, out].
    w_torch_layout = jax.nn.initializers.orthogonal(scale=0.01)(
        key, (d_out, d_in), jnp.float32)
    w = w_torch_layout.T
    b = jnp.zeros((d_out,), jnp.float32)            # bias_const = 0.0
    return w, b, logstd


# ------------------------------- main ----------------------------------------

if __name__ == "__main__":
    key = jax.random.PRNGKey(0)
    k_cnn, k_cmd, k_spd, k_w0, k_w1 = jax.random.split(key, 5)

    num_actions = 3
    ok = True
    for B in (2, 5):  # 5 exercises the row-padding path
        cnn_out = jax.random.normal(k_cnn, (B, 512), jnp.float32)
        command = jax.nn.one_hot(jax.random.randint(k_cmd, (B,), 0, 3), 3,
                                 dtype=jnp.float32)
        speed = jax.random.normal(k_spd, (B, 1), jnp.float32)

        for branched, k_w in ((False, k_w0), (True, k_w1)):
            params = make_params(k_w, branched=branched, num_actions=num_actions)
            mean, logstd = actor_forward(cnn_out, command, speed, params,
                                         branched=branched)
            jax.block_until_ready((mean, logstd))
            mean_r, logstd_r = actor_forward_ref(cnn_out, command, speed, params,
                                                 branched=branched)
            ok &= bool(jnp.allclose(mean, mean_r, atol=1e-4, rtol=1e-4))
            ok &= bool(jnp.allclose(logstd, logstd_r, atol=1e-4, rtol=1e-4))
            assert mean.shape == (B, num_actions)
            assert logstd.shape == (B, num_actions)

    if ok:
        print("KERNEL_OK")
    else:
        print("KERNEL_MISMATCH")
</pallas_src>

<mosaic_0001>
module attributes {stable_mosaic.version = 11 : i64} {
  func.func @_actor_kernel(%arg0: i32, %arg1: memref<8x512xf32, #tpu.memory_space<vmem>>, %arg2: memref<8x4xf32, #tpu.memory_space<vmem>>, %arg3: memref<512x128xf32, #tpu.memory_space<vmem>>, %arg4: memref<4x128xf32, #tpu.memory_space<vmem>>, %arg5: memref<1x128xf32, #tpu.memory_space<vmem>>, %arg6: memref<8x128xf32, #tpu.memory_space<vmem>>) attributes {dimension_semantics = [#tpu.dimension_semantics<parallel>], iteration_bounds = array<i64: 1>, scalar_prefetch = 0 : i64, scratch_operands = 0 : i64, tpu.core_type = #tpu.core_type<tc>, window_params = [{transform_indices = @transform_0, window_bounds = array<i64: 8, 512>}, {transform_indices = @transform_1, window_bounds = array<i64: 8, 4>}, {pipeline_mode = #tpu.pipeline_mode<synchronous>, transform_indices = @transform_2, window_bounds = array<i64: 512, 128>}, {pipeline_mode = #tpu.pipeline_mode<synchronous>, transform_indices = @transform_3, window_bounds = array<i64: 4, 128>}, {pipeline_mode = #tpu.pipeline_mode<synchronous>, transform_indices = @transform_4, window_bounds = array<i64: 1, 128>}, {transform_indices = @transform_5, window_bounds = array<i64: 8, 128>}]} {
    %c0 = arith.constant 0 : index
    %c0_0 = arith.constant 0 : index
    %0 = vector.load %arg1[%c0, %c0_0] : memref<8x512xf32, #tpu.memory_space<vmem>>, vector<8x512xf32>
    %c0_1 = arith.constant 0 : index
    %c0_2 = arith.constant 0 : index
    %1 = vector.load %arg3[%c0_1, %c0_2] : memref<512x128xf32, #tpu.memory_space<vmem>>, vector<512x128xf32>
    %cst = arith.constant dense<0.000000e+00> : vector<8x128xf32>
    %2 = tpu.matmul %0, %1, %cst {dimension_numbers = #tpu.dot_dimension_numbers<[1], [0], [0], [1], [0, 0, 1, 1], [], []>} : vector<8x512xf32>, vector<512x128xf32>, vector<8x128xf32> -> vector<8x128xf32>
    %c0_3 = arith.constant 0 : index
    %c0_4 = arith.constant 0 : index
    %3 = vector.load %arg2[%c0_3, %c0_4] : memref<8x4xf32, #tpu.memory_space<vmem>>, vector<8x4xf32>
    %c0_5 = arith.constant 0 : index
    %c0_6 = arith.constant 0 : index
    %4 = vector.load %arg4[%c0_5, %c0_6] : memref<4x128xf32, #tpu.memory_space<vmem>>, vector<4x128xf32>
    %5 = vector.extract_strided_slice %3 {offsets = [0, 0], sizes = [8, 1], strides = [1, 1]} : vector<8x4xf32> to vector<8x1xf32>
    %6 = vector.extract_strided_slice %4 {offsets = [0, 0], sizes = [1, 128], strides = [1, 1]} : vector<4x128xf32> to vector<1x128xf32>
    %7 = vector.broadcast %5 : vector<8x1xf32> to vector<8x128xf32>
    %8 = vector.broadcast %6 : vector<1x128xf32> to vector<8x128xf32>
    %9 = arith.mulf %7, %8 : vector<8x128xf32>
    %10 = arith.addf %2, %9 : vector<8x128xf32>
    %11 = vector.extract_strided_slice %3 {offsets = [0, 1], sizes = [8, 1], strides = [1, 1]} : vector<8x4xf32> to vector<8x1xf32>
    %12 = vector.extract_strided_slice %4 {offsets = [1, 0], sizes = [1, 128], strides = [1, 1]} : vector<4x128xf32> to vector<1x128xf32>
    %13 = vector.broadcast %11 : vector<8x1xf32> to vector<8x128xf32>
    %14 = vector.broadcast %12 : vector<1x128xf32> to vector<8x128xf32>
    %15 = arith.mulf %13, %14 : vector<8x128xf32>
    %16 = arith.addf %10, %15 : vector<8x128xf32>
    %17 = vector.extract_strided_slice %3 {offsets = [0, 2], sizes = [8, 1], strides = [1, 1]} : vector<8x4xf32> to vector<8x1xf32>
    %18 = vector.extract_strided_slice %4 {offsets = [2, 0], sizes = [1, 128], strides = [1, 1]} : vector<4x128xf32> to vector<1x128xf32>
    %19 = vector.broadcast %17 : vector<8x1xf32> to vector<8x128xf32>
    %20 = vector.broadcast %18 : vector<1x128xf32> to vector<8x128xf32>
    %21 = arith.mulf %19, %20 : vector<8x128xf32>
    %22 = arith.addf %16, %21 : vector<8x128xf32>
    %23 = vector.extract_strided_slice %3 {offsets = [0, 3], sizes = [8, 1], strides = [1, 1]} : vector<8x4xf32> to vector<8x1xf32>
    %24 = vector.extract_strided_slice %4 {offsets = [3, 0], sizes = [1, 128], strides = [1, 1]} : vector<4x128xf32> to vector<1x128xf32>
    %25 = vector.broadcast %23 : vector<8x1xf32> to vector<8x128xf32>
    %26 = vector.broadcast %24 : vector<1x128xf32> to vector<8x128xf32>
    %27 = arith.mulf %25, %26 : vector<8x128xf32>
    %28 = arith.addf %22, %27 : vector<8x128xf32>
    %c0_7 = arith.constant 0 : index
    %c0_8 = arith.constant 0 : index
    %29 = vector.load %arg5[%c0_7, %c0_8] : memref<1x128xf32, #tpu.memory_space<vmem>>, vector<1x128xf32>
    %30 = vector.broadcast %29 : vector<1x128xf32> to vector<8x128xf32>
    %31 = arith.addf %28, %30 : vector<8x128xf32>
    %c0_9 = arith.constant 0 : index
    %c0_10 = arith.constant 0 : index
    %32 = vector.load %arg6[%c0_9, %c0_10] : memref<8x128xf32, #tpu.memory_space<vmem>>, vector<8x128xf32>
    tpu.vector_store %arg6[%c0_9, %c0_10], %31 {strides = array<i32>} : memref<8x128xf32, #tpu.memory_space<vmem>>, vector<8x128xf32>,
    return
  }
  func.func @transform_0(%arg0: i32) -> (i32, i32) {
    %c0_i32 = arith.constant 0 : i32
    %c0_i32_0 = arith.constant 0 : i32
    return %arg0, %c0_i32 : i32, i32
  }
  func.func @transform_1(%arg0: i32) -> (i32, i32) {
    %c0_i32 = arith.constant 0 : i32
    %c0_i32_0 = arith.constant 0 : i32
    return %arg0, %c0_i32 : i32, i32
  }
  func.func @transform_2(%arg0: i32) -> (i32, i32) {
    %c0_i32 = arith.constant 0 : i32
    %c0_i32_0 = arith.constant 0 : i32
    %c0_i32_1 = arith.constant 0 : i32
    return %c0_i32, %c0_i32_0 : i32, i32
  }
  func.func @transform_3(%arg0: i32) -> (i32, i32) {
    %c0_i32 = arith.constant 0 : i32
    %c0_i32_0 = arith.constant 0 : i32
    %c0_i32_1 = arith.constant 0 : i32
    return %c0_i32, %c0_i32_0 : i32, i32
  }
  func.func @transform_4(%arg0: i32) -> (i32, i32) {
    %c0_i32 = arith.constant 0 : i32
    %c0_i32_0 = arith.constant 0 : i32
    %c0_i32_1 = arith.constant 0 : i32
    return %c0_i32, %c0_i32_0 : i32, i32
  }
  func.func @transform_5(%arg0: i32) -> (i32, i32) {
    %c0_i32 = arith.constant 0 : i32
    %c0_i32_0 = arith.constant 0 : i32
    return %arg0, %c0_i32 : i32, i32
  }
}

</mosaic_0001>

<bundles_post_ra>
// kernel: tpu_custom_call.1
= control target key start
LH: loop header
LB: loop body
LE: loop exit
PB: predicated region body
PF: predicated region fallthrough
CT: control target
= control target key end

     0   :  { %10 = vsyncpa [#allocation3], 0  ;;  %s634_s0 = inlined_call_operand.hbm [shape: f32[8,512], index: 0, kind: input, shape index: {}]   ;;  %s635_s1 = inlined_call_operand.vmem [shape: f32[8,4], index: 1, kind: input, shape index: {}]   ;;  %s636_s2 = inlined_call_operand.hbm [shape: f32[512,128], index: 2, kind: input, shape index: {}]   ;;  %s637_s3 = inlined_call_operand.vmem [shape: f32[4,128], index: 3, kind: input, shape index: {}]   ;;  %s638_s4 = inlined_call_operand.vmem [shape: f32[1,128], index: 4, kind: input, shape index: {}]   ;;  %s639_s5 = inlined_call_operand.hbm [shape: f32[8,128], index: 5, kind: output, shape index: {}]  }
   0x1   :  { %11 = vsyncpa [#allocation6], 0 }
   0x2   :  { %12 = vsyncpa [#allocation4], 0  ;;  %s543_s18 = smov [#allocation2]   ;;  %s544_s20 = smov [#allocation5]  }
   0x3   :  { %s19_s19 = sshll.u32 %s543_s18, 4  ;;  %s30_s21 = sshll.u32 %s544_s20, 4  ;;  %s20_s19 = int_to_ptr.vmem [resolvable:$true] %s19_s19  ;;  %s582_s21 = int_to_ptr.vmem [resolvable:$true] %s30_s21 }
   0x4   :  { %s471_s24 = scalar_lea.hbm %s634_s0, 512 }
   0x5   :  { %p472_p0 = scmp.ne.s32.totalorder %s634_s0, %s471_s24  ;;  %p475_p1 = scmp.lt.u32.totalorder %s471_s24, %s634_s0 }
   0x7   :  { %p477_p2 = pnand %p475_p1, %p472_p0 }
   0x9   :  { %480 = shalt.err (!%p477_p2)
}
   0xa   :  { %s481_s29 = scalar_lea.vmem %s20_s19, 512  ;;  %p486_p4 = scmp.lt.s32.totalorder %s20_s19, %s20_s19 }
   0xb   :  { %p482_p3 = scmp.ne.s32.totalorder %s20_s19, %s481_s29  ;;  %p487_p5 = scmp.lt.s32.totalorder %s481_s29, %s481_s29 }
   0xd   :  { %p488_p6 = por %p487_p5, %p486_p4 }
   0xf   :  { %p489_p7 = pnand %p488_p6, %p482_p3 }
  0x11   :  { %492 = shalt.err (!%p489_p7)
}
  0x12   :  { %22 = dma.hbm_to_vmem [thread:$0]  %s634_s0, 512, %s20_s19, [#allocation3]  }
  0x13   :  { %s493_s9 = scalar_lea.hbm %s636_s2, 8192 }
  0x14   :  { %p494_p8 = scmp.ne.s32.totalorder %s636_s2, %s493_s9  ;;  %p497_p9 = scmp.lt.u32.totalorder %s493_s9, %s636_s2 }
  0x16   :  { %p499_p10 = pnand %p497_p9, %p494_p8 }
  0x18   :  { %502 = shalt.err (!%p499_p10)
}
  0x19   :  { %s503_s14 = scalar_lea.vmem %s582_s21, 8192  ;;  %p508_p12 = scmp.lt.s32.totalorder %s582_s21, %s582_s21 }
  0x1a   :  { %p504_p11 = scmp.ne.s32.totalorder %s582_s21, %s503_s14  ;;  %p509_p13 = scmp.lt.s32.totalorder %s503_s14, %s503_s14 }
  0x1c   :  { %p510_p0 = por %p509_p13, %p508_p12 }
  0x1e   :  { %p511_p1 = pnand %p510_p0, %p504_p11 }
  0x20   :  { %514 = shalt.err (!%p511_p1)
}
  0x21   :  { %s545_s0 = smov 128   ;;  %s546_s15 = smov 8  }
  0x22   :  { %36 = dma.hbm_to_vmem [thread:$0]  %s636_s2, 8192, %s582_s21, [#allocation6], %s545_s0, %s545_s0, %s546_s15  }
  0x23   :  { %537 = dma.done.wait [#allocation3], 512  }
  0x24   :  { %538 = vsyncadd [#allocation3], 4294966784 }
  0x25   :  { %539 = dma.done.wait [#allocation6], 8192  }
  0x26   :  { %540 = vsyncadd [#allocation6], 4294959104  ;;  %v547_v0 = vmov 0   ;;  %v548_v1 = vmov 2   ;;  %v67_v2 = vld [vmem:[#allocation5 + $0x80] sm:$0xff]  ;;  %v68_v3 = vld [vmem:[#allocation5 + $0x88] sm:$0xff] }
  0x27   :  { %466 = vset.pattern.permute.xlu0 %v547_v0  ;;  %468 = vset.pattern.permute.xlu1 %v548_v1  ;;  %v51_v4 = vld [vmem:[#allocation5] sm:$0xff]  ;;  %v393_v5 = vpack.c.bf16 %v68_v3, %v67_v2  ;;  %v52_v6 = vld [vmem:[#allocation5 + $0x8] sm:$0xff]  ;;  %v69_v13 = vld [vmem:[#allocation5 + $0x90] sm:$0xff]  ;;  %s551_s21 = smov [#allocation7]  }
  0x28   :  { %v99_v7 = vld [vmem:[#allocation5 + $0x180] sm:$0xff]  ;;  %v100_v8 = vld [vmem:[#allocation5 + $0x188] sm:$0xff]  ;;  %v395_v9 = vpack.c.bf16 %v52_v6, %v51_v4  ;;  %v70_v15 = vld [vmem:[#allocation5 + $0x98] sm:$0xff]  ;;  %s312_s22 = sshll.u32 %s551_s21, 4  ;;  %s313_s22 = int_to_ptr.vmem [resolvable:$true] %s312_s22 }
  0x29   :  { %v425_v10 = vpack.c.bf16 %v100_v8, %v99_v7  ;;  %v83_v11 = vld [vmem:[#allocation5 + $0x100] sm:$0xff]  ;;  %v84_v12 = vld [vmem:[#allocation5 + $0x108] sm:$0xff]  ;;  %394 = vmatprep.subr.bf16.mxu0 %v393_v5  ;;  %v53_v16 = vld [vmem:[#allocation5 + $0x10] sm:$0xff]  ;;  %v397_v18 = vpack.c.bf16 %v70_v15, %v69_v13  ;;  %s515_s23 = scalar_lea.vmem %s313_s22, 128  ;;  %p520_p3 = scmp.lt.s32.totalorder %s313_s22, %s313_s22 }
  0x2a   :  { %v427_v14 = vpack.c.bf16 %v84_v12, %v83_v11  ;;  %v54_v17 = vld [vmem:[#allocation5 + $0x18] sm:$0xff]  ;;  %396 = vmatpush3.bf16.msra.mxu0 %v395_v9  ;;  %v101_v20 = vld [vmem:[#allocation5 + $0x190] sm:$0xff]  ;;  %v71_v25 = vld [vmem:[#allocation5 + $0xa0] sm:$0xff]  ;;  %p516_p2 = scmp.ne.s32.totalorder %s313_s22, %s515_s23  ;;  %p521_p4 = scmp.lt.s32.totalorder %s515_s23, %s515_s23 }
  0x2b   :  { %426 = vmatprep.subr.bf16.mxu1 %v425_v10  ;;  %v399_v19 = vpack.c.bf16 %v54_v17, %v53_v16  ;;  %v102_v21 = vld [vmem:[#allocation5 + $0x198] sm:$0xff]  ;;  %v85_v22 = vld [vmem:[#allocation5 + $0x110] sm:$0xff]  ;;  %v72_v26 = vld [vmem:[#allocation5 + $0xa8] sm:$0xff]  ;;  %398 = vmatprep.subr.bf16.mxu0 %v397_v18 }
  0x2c   :  { %428 = vmatpush3.bf16.msra.mxu1 %v427_v14  ;;  %v429_v23 = vpack.c.bf16 %v102_v21, %v101_v20  ;;  %v86_v24 = vld [vmem:[#allocation5 + $0x118] sm:$0xff]  ;;  %v401_v28 = vpack.c.bf16 %v72_v26, %v71_v25  ;;  %v55_v29 = vld [vmem:[#allocation5 + $0x20] sm:$0xff]  ;;  %v56_v30 = vld [vmem:[#allocation5 + $0x28] sm:$0xff]  ;;  %p522_p5 = por %p521_p4, %p520_p3 }
  0x2d   :  { %v431_v27 = vpack.c.bf16 %v86_v24, %v85_v22  ;;  %v103_v31 = vld [vmem:[#allocation5 + $0x1a0] sm:$0xff]  ;;  %v104_v32 = vld [vmem:[#allocation5 + $0x1a8] sm:$0xff]  ;;  %v403_v35 = vpack.c.bf16 %v56_v30, %v55_v29  ;;  %v73_v37 = vld [vmem:[#allocation5 + $0xb0] sm:$0xff] }
  0x2e   :  { %430 = vmatprep.subr.bf16.mxu1 %v429_v23  ;;  %v87_v33 = vld [vmem:[#allocation5 + $0x120] sm:$0xff]  ;;  %v88_v34 = vld [vmem:[#allocation5 + $0x128] sm:$0xff]  ;;  %400 = vmatpush3.bf16.msra.mxu0 %v399_v19  ;;  %v433_v36 = vpack.c.bf16 %v104_v32, %v103_v31  ;;  %v74_v38 = vld [vmem:[#allocation5 + $0xb8] sm:$0xff]  ;;  %p523_p6 = pnand %p522_p5, %p516_p2 }
  0x2f   :  { %v57_v39 = vld [vmem:[#allocation5 + $0x30] sm:$0xff]  ;;  %402 = vmatprep.subr.bf16.mxu0 %v401_v28  ;;  %v435_v40 = vpack.c.bf16 %v88_v34, %v87_v33  ;;  %v405_v41 = vpack.c.bf16 %v74_v38, %v73_v37  ;;  %v58_v42 = vld [vmem:[#allocation5 + $0x38] sm:$0xff]  ;;  %v75_v48 = vld [vmem:[#allocation5 + $0xc0] sm:$0xff]  ;;  %v550_v38 = vmov 3  }
  0x30   :  { %432 = vmatpush3.bf16.msra.mxu1 %v431_v27  ;;  %v105_v43 = vld [vmem:[#allocation5 + $0x1b0] sm:$0xff]  ;;  %v106_v44 = vld [vmem:[#allocation5 + $0x1b8] sm:$0xff]  ;;  %v76_v49 = vld [vmem:[#allocation5 + $0xc8] sm:$0xff]  ;;  %v407_v50 = vpack.c.bf16 %v58_v42, %v57_v39 }
  0x31   :  { %434 = vmatprep.subr.bf16.mxu1 %v433_v36  ;;  %v437_v45 = vpack.c.bf16 %v106_v44, %v105_v43  ;;  %v89_v46 = vld [vmem:[#allocation5 + $0x130] sm:$0xff]  ;;  %v90_v47 = vld [vmem:[#allocation5 + $0x138] sm:$0xff]  ;;  %v107_v51 = vld [vmem:[#allocation5 + $0x1c0] sm:$0xff]  ;;  %v409_v54 = vpack.c.bf16 %v76_v49, %v75_v48 }
  0x32   :  { %404 = vmatpush3.bf16.msra.mxu0 %v403_v35  ;;  %v108_v52 = vld [vmem:[#allocation5 + $0x1c8] sm:$0xff]  ;;  %v439_v53 = vpack.c.bf16 %v90_v47, %v89_v46  ;;  %v59_v55 = vld [vmem:[#allocation5 + $0x40] sm:$0xff]  ;;  %v77_v60 = vld [vmem:[#allocation5 + $0xd0] sm:$0xff]  ;;  %v549_v35 = vmov 1  }
  0x33   :  { %406 = vmatprep.subr.bf16.mxu0 %v405_v41  ;;  %v60_v56 = vld [vmem:[#allocation5 + $0x48] sm:$0xff]  ;;  %v91_v57 = vld [vmem:[#allocation5 + $0x140] sm:$0xff]  ;;  %v441_v58 = vpack.c.bf16 %v108_v52, %v107_v51  ;;  %v78_v61 = vld [vmem:[#allocation5 + $0xd8] sm:$0xff]  ;;  %v122_v41 = vlaneseq }
  0x34   :  { %436 = vmatpush3.bf16.msra.mxu1 %v435_v40  ;;  %v92_v59 = vld [vmem:[#allocation5 + $0x148] sm:$0xff]  ;;  %v109_v62 = vld [vmem:[#allocation5 + $0x1d0] sm:$0xff]  ;;  %v110_v63 = vld [vmem:[#allocation5 + $0x1d8] sm:$0xff]  ;;  %v411_v0 = vpack.c.bf16 %v60_v56, %v59_v55  ;;  %v413_v2 = vpack.c.bf16 %v78_v61, %v77_v60 }
  0x35   :  { %438 = vmatprep.subr.bf16.mxu1 %v437_v45  ;;  %v443_v1 = vpack.c.bf16 %v92_v59, %v91_v57  ;;  %v61_v3 = vld [vmem:[#allocation5 + $0x50] sm:$0xff]  ;;  %v62_v4 = vld [vmem:[#allocation5 + $0x58] sm:$0xff]  ;;  %v445_v6 = vpack.c.bf16 %v110_v63, %v109_v62  ;;  %v79_v8 = vld [vmem:[#allocation5 + $0xe0] sm:$0xff]  ;;  %v123_v42 = vshrl.u32 %v122_v41, 7 }
  0x36   :  { %408 = vmatpush3.bf16.msra.mxu0 %v407_v50  ;;  %v93_v5 = vld [vmem:[#allocation5 + $0x150] sm:$0xff]  ;;  %v94_v7 = vld [vmem:[#allocation5 + $0x158] sm:$0xff]  ;;  %v80_v9 = vld [vmem:[#allocation5 + $0xe8] sm:$0xff]  ;;  %v415_v12 = vpack.c.bf16 %v62_v4, %v61_v3 }
  0x37   :  { %410 = vmatprep.subr.bf16.mxu0 %v409_v54  ;;  %v111_v10 = vld [vmem:[#allocation5 + $0x1e0] sm:$0xff]  ;;  %v112_v11 = vld [vmem:[#allocation5 + $0x1e8] sm:$0xff]  ;;  %v447_v16 = vpack.c.bf16 %v94_v7, %v93_v5  ;;  %v417_v17 = vpack.c.bf16 %v80_v9, %v79_v8  ;;  %v81_v19 = vld [vmem:[#allocation5 + $0xf0] sm:$0xff]  ;;  %v124_v43 = vsub.s32 0, %v123_v42  ;;  %v273_v47 = vsub.s32 1, %v123_v42 }
  0x38   :  { %440 = vmatpush3.bf16.msra.mxu1 %v439_v53  ;;  %v63_v13 = vld [vmem:[#allocation5 + $0x60] sm:$0xff]  ;;  %v64_v14 = vld [vmem:[#allocation5 + $0x68] sm:$0xff]  ;;  %v449_v21 = vpack.c.bf16 %v112_v11, %v111_v10  ;;  %v82_v22 = vld [vmem:[#allocation5 + $0xf8] sm:$0xff]  ;;  %v283_v51 = vsub.s32 2, %v123_v42  ;;  %v293_v54 = vsub.s32 3, %v123_v42 }
  0x39   :  { %442 = vmatprep.subr.bf16.mxu1 %v441_v58  ;;  %v95_v15 = vld [vmem:[#allocation5 + $0x160] sm:$0xff]  ;;  %v96_v18 = vld [vmem:[#allocation5 + $0x168] sm:$0xff]  ;;  %v50_v23 = vld [vmem:[#allocation2 + $0x18] sm:$0xff]  ;;  %v419_v27 = vpack.c.bf16 %v64_v14, %v63_v13  ;;  %v421_v29 = vpack.c.bf16 %v82_v22, %v81_v19 }
  0x3a   :  { %412 = vmatpush3.bf16.msra.mxu0 %v411_v0  ;;  %v48_v20 = vld [vmem:[#allocation2 + $0x8] sm:$0xff]  ;;  %v115_v24 = vld [vmem:[%s635_s1] sm:$0xff]  ;;  %v113_v25 = vld [vmem:[#allocation5 + $0x1f0] sm:$0xff]  ;;  %261 = vmatprep.mubr.f32.mxu1 %v50_v23  ;;  %v451_v28 = vpack.c.bf16 %v96_v18, %v95_v15 }
  0x3b   :  { %414 = vmatprep.subr.bf16.mxu0 %v413_v2  ;;  %191 = vmatprep.mubr.f32.mxu0 %v48_v20  ;;  %v114_v26 = vld [vmem:[#allocation5 + $0x1f8] sm:$0xff]  ;;  %v65_v30 = vld [vmem:[#allocation5 + $0x70] sm:$0xff]  ;;  %v47_v39 = vld [vmem:[#allocation2] sm:$0xff] }
  0x3c   :  { %444 = vmatpush3.bf16.msra.mxu1 %v443_v1  ;;  %119 = vperm.xlu0 %466, %v115_v24   ;;  %v66_v31 = vld [vmem:[#allocation5 + $0x78] sm:$0xff]  ;;  %v453_v32 = vpack.c.bf16 %v114_v26, %v113_v25  ;;  %v97_v33 = vld [vmem:[#allocation5 + $0x170] sm:$0xff]  ;;  %v116_v44 = vld [vmem:[%s637_s3] sm:$0xf] }
  0x3d   :  { %446 = vmatprep.subr.bf16.mxu1 %v445_v6  ;;  %278 = vperm.xlu1 %468, %v115_v24   ;;  %v98_v34 = vld [vmem:[#allocation5 + $0x178] sm:$0xff]  ;;  %v423_v36 = vpack.c.bf16 %v66_v31, %v65_v30  ;;  %v49_v40 = vld [vmem:[#allocation2 + $0x10] sm:$0xff]  ;;  %v125_v46 = vrot.slane %v116_v44, %v124_v43  ;;  %v274_v52 = vrot.slane %v116_v44, %v273_v47  ;;  %v322_v6 = vld [vmem:[%s638_s4] ss:$0 sm:$0xff] }
  0x3e   :  { %416 = vmatpush3.bf16.msra.mxu0 %v415_v12  ;;  %v455_v37 = vpack.c.bf16 %v98_v34, %v97_v33  ;;  %v284_v61 = vrot.slane %v116_v44, %v283_v51  ;;  %v294_v63 = vrot.slane %v116_v44, %v293_v54 }
  0x3f   :  { %418 = vmatprep.subr.bf16.mxu0 %v417_v17 }
  0x40   :  { %448 = vmatpush3.bf16.msra.mxu1 %v447_v16  ;;  %467 = vset.pattern.permute.xlu0 %v549_v35 }
  0x41   :  { %450 = vmatprep.subr.bf16.mxu1 %v449_v21  ;;  %268 = vperm.xlu0 %467, %v115_v24  }
  0x42   :  { %420 = vmatpush3.bf16.msra.mxu0 %v419_v27  ;;  %469 = vset.pattern.permute.xlu1 %v550_v38 }
  0x43   :  { %422 = vmatprep.subr.bf16.mxu0 %v421_v29  ;;  %288 = vperm.xlu1 %469, %v115_v24  }
  0x44   :  { %452 = vmatpush3.bf16.msra.mxu1 %v451_v28 }
  0x45   :  { %454 = vmatprep.subr.bf16.mxu1 %v453_v32  ;;  %470 = vset.pattern.permute.xlu0 %v550_v38 }
  0x46   :  { %424 = vmatpush3.bf16.msra.mxu0 %v423_v36 }
  0x48   :  { %456 = vmatpush3.bf16.msra.mxu1 %v455_v37 }
  0x49   :  { %192 = vmatmul.mubr.f32.vlgmr.msra.gmra.mrb[0].mxu0 %v47_v39 }
  0x4b   :  { %262 = vmatmul.mubr.f32.vlgmr.msra.gmra.mrb[0].mxu1 %v49_v40 }
  0xbb   :  { %v120_v45 = vpop.permute.xlu0 %119 }
  0xbc   :  { %v279_v48 = vpop.permute.xlu1 %278  ;;  %v126_v49 = vmul.f32 %v125_v46, %v120_v45 }
  0xbd   :  { %v285_v2 = vmul.f32 %v284_v61, %v279_v48 }
  0xc0   :  { %v269_v53 = vpop.permute.xlu0 %268 }
  0xc1   :  { %v275_v62 = vmul.f32 %v274_v52, %v269_v53 }
  0xc2   :  { %v289_v0 = vpop.permute.xlu1 %288 }
  0xc3   :  { %v295_v4 = vmul.f32 %v294_v63, %v289_v0 }
 0x11c   :  { %v355_v50 = vpop.f32.mrb[0].mxu0 }
 0x11d   :  { %v356_v55 = vpop.f32.mrb[1].mxu0 }
 0x11e   :  { %v390_v56 = vpop.f32.mrb[0].mxu1  ;;  %v357_v57 = vadd.f32 %v356_v55, %v355_v50 }
 0x11f   :  { %v391_v58 = vpop.f32.mrb[1].mxu1 }
 0x120   :  { %v392_v59 = vadd.f32 %v391_v58, %v390_v56  ;;  %v194_v60 = vadd.f32 %v357_v57, %v126_v49 }
 0x122   :  { %v264_v1 = vadd.f32 %v392_v59, %v194_v60 }
 0x124   :  { %v276_v3 = vadd.f32 %v275_v62, %v264_v1 }
 0x126   :  { %v286_v5 = vadd.f32 %v285_v2, %v276_v3 }
 0x128   :  { %v296_v7 = vadd.f32 %v295_v4, %v286_v5 }
 0x12a   :  { %v304_v8 = vadd.f32 %v322_v6, %v296_v7 }
 0x12c   :  { %305 = vst [vmem:[#allocation7] sm:$0xff] %v304_v8 }
 0x12d   :  { %526 = shalt.err (!%p523_p6)
}
 0x12e   :  { %s527_s26 = scalar_lea.hbm %s639_s5, 128 }
 0x12f   :  { %p528_p7 = scmp.ne.s32.totalorder %s639_s5, %s527_s26  ;;  %p531_p8 = scmp.lt.u32.totalorder %s527_s26, %s639_s5 }
 0x131   :  { %p533_p9 = pnand %p531_p8, %p528_p7 }
 0x133   :  { %536 = shalt.err (!%p533_p9)
}
 0x134   :  { %315 = dma.vmem_to_hbm [thread:$0]  %s313_s22, 128, %s639_s5, [#allocation4]  }
 0x135   :  { %541 = dma.done.wait [#allocation4], 128  }
 0x136   :  { %542 = vsyncadd [#allocation4], 4294967168 }
 0x137   :  { %319 = vsyncpa [#allocation3], 1 }
 0x138   :  { %320 = vsyncpa [#allocation6], 1 }
 0x139   :  { %321 = vsyncpa [#allocation4], 1 }

</bundles_post_ra>
